<compile_context>
chip_gen: v7x
topology: tpu7x:2x2x1
jax: 0.10.0
libtpu: 0.0.40
codegen_flags: <defaults>
</compile_context>

<pallas_src>
import functools

import jax
import jax.numpy as jnp
from jax.experimental import pallas as pl
from jax.experimental.pallas import tpu as pltpu


def _round_up(x, m):
    return ((x + m - 1) // m) * m


def _pad_to(a, shape):
    return jnp.pad(a, [(0, s - d) for d, s in zip(a.shape, shape)])


# ---------------------------------------------------------------------------
# Fused encoder + decoder kernel (single invocation, everything resident).
# ---------------------------------------------------------------------------
def _seq2seq_kernel(xf_ref, wie_ref, whe_ref, be_ref,
                    wid_ref, whd_ref, bd_ref, wo_ref, bo_ref,
                    y_ref, *, t_enc, t_dec, b_pad, h_pad):
    # ---- Encoder -----------------------------------------------------------
    # Time-parallel input projection for ALL steps at once (off the serial
    # chain, big-LHS MXU matmul); combined bias (bi+bh) added exactly once.
    xin = jnp.dot(xf_ref[...], wie_ref[...],
                  preferred_element_type=jnp.float32) + be_ref[...]

    # Serial recurrence: statically unrolled, only h @ Wh + tanh on the chain.
    h = jnp.zeros((b_pad, h_pad), jnp.float32)
    for t in range(t_enc):
        step_in = xin[t * b_pad:(t + 1) * b_pad, :]       # 8-aligned sublane slice
        h = jnp.tanh(step_in + jnp.dot(h, whe_ref[...],
                                       preferred_element_type=jnp.float32))

    # ---- Decoder -----------------------------------------------------------
    ctx = h
    # Per-step input is the fixed context: its matmul + combined bias are
    # computed exactly once and reused every step.
    inp = jnp.dot(ctx, wid_ref[...],
                  preferred_element_type=jnp.float32) + bd_ref[...]

    hd = ctx
    hs = []
    for _ in range(t_dec):
        hd = jnp.tanh(inp + jnp.dot(hd, whd_ref[...],
                                    preferred_element_type=jnp.float32))
        hs.append(hd)

    # Output projection batched over all decoder steps: one [T_dec*Bp, Hp] x
    # [Hp, Op] matmul + one lane-dense slab store.
    hs_all = jnp.concatenate(hs, axis=0)                   # [T_dec*Bp, Hp]
    y_ref[...] = (jnp.dot(hs_all, wo_ref[...],
                          preferred_element_type=jnp.float32)
                  + bo_ref[...]).astype(y_ref.dtype)


# ---------------------------------------------------------------------------
# Wrapper: pads to lane/sublane-dense shapes, pre-combines biases, runs the
# single fused kernel, slices back to logical shapes.
# ---------------------------------------------------------------------------
def seq2seq_forward(x, params, t_dec):
    """x: [T_enc, B, D_in] (time-major). Returns [T_dec, B, output_dim]."""
    (w_i2h_e, b_i2h_e, w_h2h_e, b_h2h_e,
     w_i2h_d, b_i2h_d, w_h2h_d, b_h2h_d, w_out, b_out) = params
    t_enc, b, d_in = x.shape
    h = w_h2h_e.shape[0]
    o = w_out.shape[0]

    b_pad = _round_up(max(b, 8), 8)       # f32 sublane
    d_pad = _round_up(d_in, 128)          # lane
    h_pad = _round_up(h, 128)
    o_pad = _round_up(o, 128)

    # Zero-filled padding keeps padded lanes exactly zero through tanh.
    x_flat = _pad_to(x.astype(jnp.float32),
                     (t_enc, b_pad, d_pad)).reshape(t_enc * b_pad, d_pad)
    wie = _pad_to(w_i2h_e.T, (d_pad, h_pad))
    whe = _pad_to(w_h2h_e.T, (h_pad, h_pad))
    be = _pad_to((b_i2h_e + b_h2h_e).reshape(1, h), (1, h_pad))
    wid = _pad_to(w_i2h_d.T, (h_pad, h_pad))
    whd = _pad_to(w_h2h_d.T, (h_pad, h_pad))
    bd = _pad_to((b_i2h_d + b_h2h_d).reshape(1, h), (1, h_pad))
    wo = _pad_to(w_out.T, (h_pad, o_pad))
    bo = _pad_to(b_out.reshape(1, o), (1, o_pad))

    kernel = functools.partial(_seq2seq_kernel, t_enc=t_enc, t_dec=t_dec,
                               b_pad=b_pad, h_pad=h_pad)
    vmem = pl.BlockSpec(memory_space=pltpu.MemorySpace.VMEM)
    y_flat = pl.pallas_call(
        kernel,
        out_shape=jax.ShapeDtypeStruct((t_dec * b_pad, o_pad), jnp.float32),
        in_specs=[vmem] * 9,
        out_specs=vmem,
    )(x_flat, wie, whe, be, wid, whd, bd, wo, bo)

    y = y_flat.reshape(t_dec, b_pad, o_pad)
    return y[:, :b, :o]


def seq2seq_reference(x, params, t_dec):
    """Pure-JAX reference mirroring the PyTorch math."""
    (w_i2h_e, b_i2h_e, w_h2h_e, b_h2h_e,
     w_i2h_d, b_i2h_d, w_h2h_d, b_h2h_d, w_out, b_out) = params
    t_enc, b, _ = x.shape
    h_dim = w_h2h_e.shape[0]
    hp = jax.lax.Precision.HIGHEST
    h = jnp.zeros((b, h_dim), jnp.float32)
    for t in range(t_enc):
        h = jnp.tanh(jnp.dot(x[t], w_i2h_e.T, precision=hp) + b_i2h_e
                     + jnp.dot(h, w_h2h_e.T, precision=hp) + b_h2h_e)
    ctx = h
    hd = ctx
    ys = []
    for _ in range(t_dec):
        hd = jnp.tanh(jnp.dot(ctx, w_i2h_d.T, precision=hp) + b_i2h_d
                      + jnp.dot(hd, w_h2h_d.T, precision=hp) + b_h2h_d)
        ys.append(jnp.dot(hd, w_out.T, precision=hp) + b_out)
    return jnp.stack(ys, axis=0)


if __name__ == "__main__":
    # Small shapes consistent with the module.
    T_ENC, T_DEC = 8, 6
    B, D_IN, H, O = 2, 16, 32, 24

    key = jax.random.PRNGKey(0)
    keys = jax.random.split(key, 11)

    x = jax.random.normal(keys[0], (T_ENC, B, D_IN), dtype=jnp.float32)

    def linear(kw, kb, out_dim, in_dim):
        w = jax.random.normal(kw, (out_dim, in_dim), dtype=jnp.float32) * 0.1
        bvec = jax.random.normal(kb, (out_dim,), dtype=jnp.float32) * 0.1
        return w, bvec

    w_i2h_e, b_i2h_e = linear(keys[1], keys[2], H, D_IN)   # encoder i2h
    w_h2h_e, b_h2h_e = linear(keys[3], keys[4], H, H)      # encoder h2h
    w_i2h_d, b_i2h_d = linear(keys[5], keys[6], H, H)      # decoder i2h (ctx)
    w_h2h_d, b_h2h_d = linear(keys[7], keys[8], H, H)      # decoder h2h
    w_out, b_out = linear(keys[9], keys[10], O, H)         # output projection

    params = (w_i2h_e, b_i2h_e, w_h2h_e, b_h2h_e,
              w_i2h_d, b_i2h_d, w_h2h_d, b_h2h_d, w_out, b_out)

    out = seq2seq_forward(x, params, T_DEC)
    out = jax.block_until_ready(out)

    ref = seq2seq_reference(x, params, T_DEC)
    assert out.shape == (T_DEC, B, O), out.shape
    assert jnp.allclose(out, ref, atol=2e-4, rtol=2e-4), (
        "mismatch vs reference, max abs err = "
        f"{float(jnp.max(jnp.abs(out - ref)))}")

    print("KERNEL_OK")
</pallas_src>

<mosaic_0001>
module attributes {stable_mosaic.version = 11 : i64} {
  func.func @_seq2seq_kernel(%arg0: memref<64x128xf32, #tpu.memory_space<vmem>>, %arg1: memref<128x128xf32, #tpu.memory_space<vmem>>, %arg2: memref<128x128xf32, #tpu.memory_space<vmem>>, %arg3: memref<1x128xf32, #tpu.memory_space<vmem>>, %arg4: memref<128x128xf32, #tpu.memory_space<vmem>>, %arg5: memref<128x128xf32, #tpu.memory_space<vmem>>, %arg6: memref<1x128xf32, #tpu.memory_space<vmem>>, %arg7: memref<128x128xf32, #tpu.memory_space<vmem>>, %arg8: memref<1x128xf32, #tpu.memory_space<vmem>>, %arg9: memref<48x128xf32, #tpu.memory_space<vmem>>) attributes {dimension_semantics = [], scalar_prefetch = 0 : i64, scratch_operands = 0 : i64, tpu.core_type = #tpu.core_type<tc>} {
    %c0 = arith.constant 0 : index
    %c0_0 = arith.constant 0 : index
    %0 = vector.load %arg0[%c0, %c0_0] : memref<64x128xf32, #tpu.memory_space<vmem>>, vector<64x128xf32>
    %c0_1 = arith.constant 0 : index
    %c0_2 = arith.constant 0 : index
    %1 = vector.load %arg1[%c0_1, %c0_2] : memref<128x128xf32, #tpu.memory_space<vmem>>, vector<128x128xf32>
    %cst = arith.constant dense<0.000000e+00> : vector<64x128xf32>
    %2 = tpu.matmul %0, %1, %cst {dimension_numbers = #tpu.dot_dimension_numbers<[1], [0], [0], [1], [0, 0, 1, 1], [], []>} : vector<64x128xf32>, vector<128x128xf32>, vector<64x128xf32> -> vector<64x128xf32>
    %c0_3 = arith.constant 0 : index
    %c0_4 = arith.constant 0 : index
    %3 = vector.load %arg3[%c0_3, %c0_4] : memref<1x128xf32, #tpu.memory_space<vmem>>, vector<1x128xf32>
    %4 = vector.broadcast %3 : vector<1x128xf32> to vector<64x128xf32>
    %5 = arith.addf %2, %4 : vector<64x128xf32>
    %cst_5 = arith.constant 0.000000e+00 : f32
    %6 = vector.broadcast %cst_5 : f32 to vector<8x128xf32>
    %7 = vector.extract_strided_slice %5 {offsets = [0, 0], sizes = [8, 128], strides = [1, 1]} : vector<64x128xf32> to vector<8x128xf32>
    %c0_6 = arith.constant 0 : index
    %c0_7 = arith.constant 0 : index
    %8 = vector.load %arg2[%c0_6, %c0_7] : memref<128x128xf32, #tpu.memory_space<vmem>>, vector<128x128xf32>
    %cst_8 = arith.constant dense<0.000000e+00> : vector<8x128xf32>
    %9 = tpu.matmul %6, %8, %cst_8 {dimension_numbers = #tpu.dot_dimension_numbers<[1], [0], [0], [1], [0, 0, 1, 1], [], []>} : vector<8x128xf32>, vector<128x128xf32>, vector<8x128xf32> -> vector<8x128xf32>
    %10 = arith.addf %7, %9 : vector<8x128xf32>
    %11 = math.tanh %10 : vector<8x128xf32>
    %12 = vector.extract_strided_slice %5 {offsets = [8, 0], sizes = [8, 128], strides = [1, 1]} : vector<64x128xf32> to vector<8x128xf32>
    %c0_9 = arith.constant 0 : index
    %c0_10 = arith.constant 0 : index
    %13 = vector.load %arg2[%c0_9, %c0_10] : memref<128x128xf32, #tpu.memory_space<vmem>>, vector<128x128xf32>
    %cst_11 = arith.constant dense<0.000000e+00> : vector<8x128xf32>
    %14 = tpu.matmul %11, %13, %cst_11 {dimension_numbers = #tpu.dot_dimension_numbers<[1], [0], [0], [1], [0, 0, 1, 1], [], []>} : vector<8x128xf32>, vector<128x128xf32>, vector<8x128xf32> -> vector<8x128xf32>
    %15 = arith.addf %12, %14 : vector<8x128xf32>
    %16 = math.tanh %15 : vector<8x128xf32>
    %17 = vector.extract_strided_slice %5 {offsets = [16, 0], sizes = [8, 128], strides = [1, 1]} : vector<64x128xf32> to vector<8x128xf32>
    %c0_12 = arith.constant 0 : index
    %c0_13 = arith.constant 0 : index
    %18 = vector.load %arg2[%c0_12, %c0_13] : memref<128x128xf32, #tpu.memory_space<vmem>>, vector<128x128xf32>
    %cst_14 = arith.constant dense<0.000000e+00> : vector<8x128xf32>
    %19 = tpu.matmul %16, %18, %cst_14 {dimension_numbers = #tpu.dot_dimension_numbers<[1], [0], [0], [1], [0, 0, 1, 1], [], []>} : vector<8x128xf32>, vector<128x128xf32>, vector<8x128xf32> -> vector<8x128xf32>
    %20 = arith.addf %17, %19 : vector<8x128xf32>
    %21 = math.tanh %20 : vector<8x128xf32>
    %22 = vector.extract_strided_slice %5 {offsets = [24, 0], sizes = [8, 128], strides = [1, 1]} : vector<64x128xf32> to vector<8x128xf32>
    %c0_15 = arith.constant 0 : index
    %c0_16 = arith.constant 0 : index
    %23 = vector.load %arg2[%c0_15, %c0_16] : memref<128x128xf32, #tpu.memory_space<vmem>>, vector<128x128xf32>
    %cst_17 = arith.constant dense<0.000000e+00> : vector<8x128xf32>
    %24 = tpu.matmul %21, %23, %cst_17 {dimension_numbers = #tpu.dot_dimension_numbers<[1], [0], [0], [1], [0, 0, 1, 1], [], []>} : vector<8x128xf32>, vector<128x128xf32>, vector<8x128xf32> -> vector<8x128xf32>
    %25 = arith.addf %22, %24 : vector<8x128xf32>
    %26 = math.tanh %25 : vector<8x128xf32>
    %27 = vector.extract_strided_slice %5 {offsets = [32, 0], sizes = [8, 128], strides = [1, 1]} : vector<64x128xf32> to vector<8x128xf32>
    %c0_18 = arith.constant 0 : index
    %c0_19 = arith.constant 0 : index
    %28 = vector.load %arg2[%c0_18, %c0_19] : memref<128x128xf32, #tpu.memory_space<vmem>>, vector<128x128xf32>
    %cst_20 = arith.constant dense<0.000000e+00> : vector<8x128xf32>
    %29 = tpu.matmul %26, %28, %cst_20 {dimension_numbers = #tpu.dot_dimension_numbers<[1], [0], [0], [1], [0, 0, 1, 1], [], []>} : vector<8x128xf32>, vector<128x128xf32>, vector<8x128xf32> -> vector<8x128xf32>
    %30 = arith.addf %27, %29 : vector<8x128xf32>
    %31 = math.tanh %30 : vector<8x128xf32>
    %32 = vector.extract_strided_slice %5 {offsets = [40, 0], sizes = [8, 128], strides = [1, 1]} : vector<64x128xf32> to vector<8x128xf32>
    %c0_21 = arith.constant 0 : index
    %c0_22 = arith.constant 0 : index
    %33 = vector.load %arg2[%c0_21, %c0_22] : memref<128x128xf32, #tpu.memory_space<vmem>>, vector<128x128xf32>
    %cst_23 = arith.constant dense<0.000000e+00> : vector<8x128xf32>
    %34 = tpu.matmul %31, %33, %cst_23 {dimension_numbers = #tpu.dot_dimension_numbers<[1], [0], [0], [1], [0, 0, 1, 1], [], []>} : vector<8x128xf32>, vector<128x128xf32>, vector<8x128xf32> -> vector<8x128xf32>
    %35 = arith.addf %32, %34 : vector<8x128xf32>
    %36 = math.tanh %35 : vector<8x128xf32>
    %37 = vector.extract_strided_slice %5 {offsets = [48, 0], sizes = [8, 128], strides = [1, 1]} : vector<64x128xf32> to vector<8x128xf32>
    %c0_24 = arith.constant 0 : index
    %c0_25 = arith.constant 0 : index
    %38 = vector.load %arg2[%c0_24, %c0_25] : memref<128x128xf32, #tpu.memory_space<vmem>>, vector<128x128xf32>
    %cst_26 = arith.constant dense<0.000000e+00> : vector<8x128xf32>
    %39 = tpu.matmul %36, %38, %cst_26 {dimension_numbers = #tpu.dot_dimension_numbers<[1], [0], [0], [1], [0, 0, 1, 1], [], []>} : vector<8x128xf32>, vector<128x128xf32>, vector<8x128xf32> -> vector<8x128xf32>
    %40 = arith.addf %37, %39 : vector<8x128xf32>
    %41 = math.tanh %40 : vector<8x128xf32>
    %42 = vector.extract_strided_slice %5 {offsets = [56, 0], sizes = [8, 128], strides = [1, 1]} : vector<64x128xf32> to vector<8x128xf32>
    %c0_27 = arith.constant 0 : index
    %c0_28 = arith.constant 0 : index
    %43 = vector.load %arg2[%c0_27, %c0_28] : memref<128x128xf32, #tpu.memory_space<vmem>>, vector<128x128xf32>
    %cst_29 = arith.constant dense<0.000000e+00> : vector<8x128xf32>
    %44 = tpu.matmul %41, %43, %cst_29 {dimension_numbers = #tpu.dot_dimension_numbers<[1], [0], [0], [1], [0, 0, 1, 1], [], []>} : vector<8x128xf32>, vector<128x128xf32>, vector<8x128xf32> -> vector<8x128xf32>
    %45 = arith.addf %42, %44 : vector<8x128xf32>
    %46 = math.tanh %45 : vector<8x128xf32>
    %c0_30 = arith.constant 0 : index
    %c0_31 = arith.constant 0 : index
    %47 = vector.load %arg4[%c0_30, %c0_31] : memref<128x128xf32, #tpu.memory_space<vmem>>, vector<128x128xf32>
    %cst_32 = arith.constant dense<0.000000e+00> : vector<8x128xf32>
    %48 = tpu.matmul %46, %47, %cst_32 {dimension_numbers = #tpu.dot_dimension_numbers<[1], [0], [0], [1], [0, 0, 1, 1], [], []>} : vector<8x128xf32>, vector<128x128xf32>, vector<8x128xf32> -> vector<8x128xf32>
    %c0_33 = arith.constant 0 : index
    %c0_34 = arith.constant 0 : index
    %49 = vector.load %arg6[%c0_33, %c0_34] : memref<1x128xf32, #tpu.memory_space<vmem>>, vector<1x128xf32>
    %50 = vector.broadcast %49 : vector<1x128xf32> to vector<8x128xf32>
    %51 = arith.addf %48, %50 : vector<8x128xf32>
    %c0_35 = arith.constant 0 : index
    %c0_36 = arith.constant 0 : index
    %52 = vector.load %arg5[%c0_35, %c0_36] : memref<128x128xf32, #tpu.memory_space<vmem>>, vector<128x128xf32>
    %cst_37 = arith.constant dense<0.000000e+00> : vector<8x128xf32>
    %53 = tpu.matmul %46, %52, %cst_37 {dimension_numbers = #tpu.dot_dimension_numbers<[1], [0], [0], [1], [0, 0, 1, 1], [], []>} : vector<8x128xf32>, vector<128x128xf32>, vector<8x128xf32> -> vector<8x128xf32>
    %54 = arith.addf %51, %53 : vector<8x128xf32>
    %55 = math.tanh %54 : vector<8x128xf32>
    %c0_38 = arith.constant 0 : index
    %c0_39 = arith.constant 0 : index
    %56 = vector.load %arg5[%c0_38, %c0_39] : memref<128x128xf32, #tpu.memory_space<vmem>>, vector<128x128xf32>
    %cst_40 = arith.constant dense<0.000000e+00> : vector<8x128xf32>
    %57 = tpu.matmul %55, %56, %cst_40 {dimension_numbers = #tpu.dot_dimension_numbers<[1], [0], [0], [1], [0, 0, 1, 1], [], []>} : vector<8x128xf32>, vector<128x128xf32>, vector<8x128xf32> -> vector<8x128xf32>
    %58 = arith.addf %51, %57 : vector<8x128xf32>
    %59 = math.tanh %58 : vector<8x128xf32>
    %c0_41 = arith.constant 0 : index
    %c0_42 = arith.constant 0 : index
    %60 = vector.load %arg5[%c0_41, %c0_42] : memref<128x128xf32, #tpu.memory_space<vmem>>, vector<128x128xf32>
    %cst_43 = arith.constant dense<0.000000e+00> : vector<8x128xf32>
    %61 = tpu.matmul %59, %60, %cst_43 {dimension_numbers = #tpu.dot_dimension_numbers<[1], [0], [0], [1], [0, 0, 1, 1], [], []>} : vector<8x128xf32>, vector<128x128xf32>, vector<8x128xf32> -> vector<8x128xf32>
    %62 = arith.addf %51, %61 : vector<8x128xf32>
    %63 = math.tanh %62 : vector<8x128xf32>
    %c0_44 = arith.constant 0 : index
    %c0_45 = arith.constant 0 : index
    %64 = vector.load %arg5[%c0_44, %c0_45] : memref<128x128xf32, #tpu.memory_space<vmem>>, vector<128x128xf32>
    %cst_46 = arith.constant dense<0.000000e+00> : vector<8x128xf32>
    %65 = tpu.matmul %63, %64, %cst_46 {dimension_numbers = #tpu.dot_dimension_numbers<[1], [0], [0], [1], [0, 0, 1, 1], [], []>} : vector<8x128xf32>, vector<128x128xf32>, vector<8x128xf32> -> vector<8x128xf32>
    %66 = arith.addf %51, %65 : vector<8x128xf32>
    %67 = math.tanh %66 : vector<8x128xf32>
    %c0_47 = arith.constant 0 : index
    %c0_48 = arith.constant 0 : index
    %68 = vector.load %arg5[%c0_47, %c0_48] : memref<128x128xf32, #tpu.memory_space<vmem>>, vector<128x128xf32>
    %cst_49 = arith.constant dense<0.000000e+00> : vector<8x128xf32>
    %69 = tpu.matmul %67, %68, %cst_49 {dimension_numbers = #tpu.dot_dimension_numbers<[1], [0], [0], [1], [0, 0, 1, 1], [], []>} : vector<8x128xf32>, vector<128x128xf32>, vector<8x128xf32> -> vector<8x128xf32>
    %70 = arith.addf %51, %69 : vector<8x128xf32>
    %71 = math.tanh %70 : vector<8x128xf32>
    %c0_50 = arith.constant 0 : index
    %c0_51 = arith.constant 0 : index
    %72 = vector.load %arg5[%c0_50, %c0_51] : memref<128x128xf32, #tpu.memory_space<vmem>>, vector<128x128xf32>
    %cst_52 = arith.constant dense<0.000000e+00> : vector<8x128xf32>
    %73 = tpu.matmul %71, %72, %cst_52 {dimension_numbers = #tpu.dot_dimension_numbers<[1], [0], [0], [1], [0, 0, 1, 1], [], []>} : vector<8x128xf32>, vector<128x128xf32>, vector<8x128xf32> -> vector<8x128xf32>
    %74 = arith.addf %51, %73 : vector<8x128xf32>
    %75 = math.tanh %74 : vector<8x128xf32>
    %76 = tpu.concatenate %55, %59, %63, %67, %71, %75 in 0 : vector<8x128xf32>, vector<8x128xf32>, vector<8x128xf32>, vector<8x128xf32>, vector<8x128xf32>, vector<8x128xf32> -> vector<48x128xf32>
    %c0_53 = arith.constant 0 : index
    %c0_54 = arith.constant 0 : index
    %77 = vector.load %arg7[%c0_53, %c0_54] : memref<128x128xf32, #tpu.memory_space<vmem>>, vector<128x128xf32>
    %cst_55 = arith.constant dense<0.000000e+00> : vector<48x128xf32>
    %78 = tpu.matmul %76, %77, %cst_55 {dimension_numbers = #tpu.dot_dimension_numbers<[1], [0], [0], [1], [0, 0, 1, 1], [], []>} : vector<48x128xf32>, vector<128x128xf32>, vector<48x128xf32> -> vector<48x128xf32>
    %c0_56 = arith.constant 0 : index
    %c0_57 = arith.constant 0 : index
    %79 = vector.load %arg8[%c0_56, %c0_57] : memref<1x128xf32, #tpu.memory_space<vmem>>, vector<1x128xf32>
    %80 = vector.broadcast %79 : vector<1x128xf32> to vector<48x128xf32>
    %81 = arith.addf %78, %80 : vector<48x128xf32>
    %c0_58 = arith.constant 0 : index
    %c0_59 = arith.constant 0 : index
    %82 = vector.load %arg9[%c0_58, %c0_59] : memref<48x128xf32, #tpu.memory_space<vmem>>, vector<48x128xf32>
    tpu.vector_store %arg9[%c0_58, %c0_59], %81 {strides = array<i32>} : memref<48x128xf32, #tpu.memory_space<vmem>>, vector<48x128xf32>,
    return
  }
}

</mosaic_0001>

<bundles_post_ra>
// kernel: tpu_custom_call.1
= control target key start
LH: loop header
LB: loop body
LE: loop exit
PB: predicated region body
PF: predicated region fallthrough
CT: control target
= control target key end

     0   :  { %14 = vsyncpa [#allocation3], 0  ;;  %s3597_s0 = inlined_call_operand.hbm [shape: f32[64,128], index: 0, kind: input, shape index: {}]   ;;  %s3598_s1 = inlined_call_operand.hbm [shape: f32[128,128], index: 1, kind: input, shape index: {}]   ;;  %s3599_s2 = inlined_call_operand.hbm [shape: f32[128,128], index: 2, kind: input, shape index: {}]   ;;  %s3600_s3 = inlined_call_operand.vmem [shape: f32[1,128], index: 3, kind: input, shape index: {}]   ;;  %s3601_s4 = inlined_call_operand.hbm [shape: f32[128,128], index: 4, kind: input, shape index: {}]   ;;  %s3602_s5 = inlined_call_operand.hbm [shape: f32[128,128], index: 5, kind: input, shape index: {}]   ;;  %s3603_s6 = inlined_call_operand.vmem [shape: f32[1,128], index: 6, kind: input, shape index: {}]   ;;  %s3604_s7 = inlined_call_operand.hbm [shape: f32[128,128], index: 7, kind: input, shape index: {}]   ;;  %s3605_s8 = inlined_call_operand.vmem [shape: f32[1,128], index: 8, kind: input, shape index: {}]   ;;  %s3606_s9 = inlined_call_operand.hbm [shape: f32[48,128], index: 9, kind: output, shape index: {}]  }
   0x1   :  { %15 = vsyncpa [#allocation6], 0 }
   0x2   :  { %16 = vsyncpa [#allocation9], 0 }
   0x3   :  { %17 = vsyncpa [#allocation12], 0 }
   0x4   :  { %18 = vsyncpa [#allocation4], 0  ;;  %s3070_s30 = smov [#allocation5]   ;;  %s3071_s11 = smov [#allocation8]  }
   0x5   :  { %s36_s10 = sshll.u32 %s3070_s30, 4  ;;  %s62_s12 = sshll.u32 %s3071_s11, 4  ;;  %s37_s10 = int_to_ptr.vmem [resolvable:$true] %s36_s10  ;;  %s3132_s12 = int_to_ptr.vmem [resolvable:$true] %s62_s12 }
   0x6   :  { %s2906_s15 = scalar_lea.hbm %s3598_s1, 2048 }
   0x7   :  { %p2907_p0 = scmp.ne.s32.totalorder %s3598_s1, %s2906_s15  ;;  %p2910_p1 = scmp.lt.u32.totalorder %s2906_s15, %s3598_s1 }
   0x9   :  { %p2912_p2 = pnand %p2910_p1, %p2907_p0 }
   0xb   :  { %2915 = shalt.err (!%p2912_p2)
}
   0xc   :  { %s2916_s20 = scalar_lea.vmem %s37_s10, 2048  ;;  %p2921_p4 = scmp.lt.s32.totalorder %s37_s10, %s37_s10 }
   0xd   :  { %p2917_p3 = scmp.ne.s32.totalorder %s37_s10, %s2916_s20  ;;  %p2922_p5 = scmp.lt.s32.totalorder %s2916_s20, %s2916_s20 }
   0xf   :  { %p2923_p6 = por %p2922_p5, %p2921_p4 }
  0x11   :  { %p2924_p7 = pnand %p2923_p6, %p2917_p3 }
  0x13   :  { %2927 = shalt.err (!%p2924_p7)
}
  0x14   :  { %s3072_s21 = smov 128   ;;  %s3073_s22 = smov 8  }
  0x15   :  { %42 = dma.hbm_to_vmem [thread:$0]  %s3598_s1, 2048, %s37_s10, [#allocation6], %s3072_s21, %s3072_s21, %s3073_s22  }
  0x16   :  { %s2928_s27 = scalar_lea.hbm %s3601_s4, 2048 }
  0x17   :  { %p2929_p8 = scmp.ne.s32.totalorder %s3601_s4, %s2928_s27  ;;  %p2932_p9 = scmp.lt.u32.totalorder %s2928_s27, %s3601_s4 }
  0x19   :  { %p2934_p10 = pnand %p2932_p9, %p2929_p8 }
  0x1b   :  { %2937 = shalt.err (!%p2934_p10)
}
  0x1c   :  { %s2938_s13 = scalar_lea.vmem %s3132_s12, 2048  ;;  %p2943_p12 = scmp.lt.s32.totalorder %s3132_s12, %s3132_s12 }
  0x1d   :  { %p2939_p11 = scmp.ne.s32.totalorder %s3132_s12, %s2938_s13  ;;  %p2944_p13 = scmp.lt.s32.totalorder %s2938_s13, %s2938_s13 }
  0x1f   :  { %p2945_p0 = por %p2944_p13, %p2943_p12 }
  0x21   :  { %p2946_p1 = pnand %p2945_p0, %p2939_p11 }
  0x23   :  { %2949 = shalt.err (!%p2946_p1)
}
  0x24   :  { %68 = dma.hbm_to_vmem [thread:$0]  %s3601_s4, 2048, %s3132_s12, [#allocation9], %s3072_s21, %s3072_s21, %s3073_s22  }
  0x25   :  { %s3074_s14 = smov [#allocation2]   ;;  %s3075_s16 = smov [#allocation7]  }
  0x26   :  { %s24_s15 = sshll.u32 %s3074_s14, 4  ;;  %s48_s17 = sshll.u32 %s3075_s16, 4  ;;  %s25_s15 = int_to_ptr.vmem [resolvable:$true] %s24_s15  ;;  %s3169_s17 = int_to_ptr.vmem [resolvable:$true] %s48_s17 }
  0x27   :  { %s2950_s20 = scalar_lea.hbm %s3597_s0, 1024 }
  0x28   :  { %p2951_p2 = scmp.ne.s32.totalorder %s3597_s0, %s2950_s20  ;;  %p2954_p3 = scmp.lt.u32.totalorder %s2950_s20, %s3597_s0 }
  0x2a   :  { %p2956_p4 = pnand %p2954_p3, %p2951_p2 }
  0x2c   :  { %2959 = shalt.err (!%p2956_p4)
}
  0x2d   :  { %s2960_s4 = scalar_lea.vmem %s25_s15, 1024  ;;  %p2965_p6 = scmp.lt.s32.totalorder %s25_s15, %s25_s15 }
  0x2e   :  { %p2961_p5 = scmp.ne.s32.totalorder %s25_s15, %s2960_s4  ;;  %p2966_p7 = scmp.lt.s32.totalorder %s2960_s4, %s2960_s4 }
  0x30   :  { %p2967_p8 = por %p2966_p7, %p2965_p6 }
  0x32   :  { %p2968_p9 = pnand %p2967_p8, %p2961_p5 }
  0x34   :  { %2971 = shalt.err (!%p2968_p9)
}
  0x35   :  { %30 = dma.hbm_to_vmem [thread:$0]  %s3597_s0, 1024, %s25_s15, [#allocation3], %s3072_s21, %s3072_s21, %s3073_s22  }
  0x36   :  { %s2972_s30 = scalar_lea.hbm %s3599_s2, 2048 }
  0x37   :  { %p2973_p10 = scmp.ne.s32.totalorder %s3599_s2, %s2972_s30  ;;  %p2976_p11 = scmp.lt.u32.totalorder %s2972_s30, %s3599_s2 }
  0x39   :  { %p2978_p12 = pnand %p2976_p11, %p2973_p10 }
  0x3b   :  { %2981 = shalt.err (!%p2978_p12)
}
  0x3c   :  { %s2982_s14 = scalar_lea.vmem %s3169_s17, 2048  ;;  %p2987_p0 = scmp.lt.s32.totalorder %s3169_s17, %s3169_s17 }
  0x3d   :  { %p2983_p13 = scmp.ne.s32.totalorder %s3169_s17, %s2982_s14  ;;  %p2988_p1 = scmp.lt.s32.totalorder %s2982_s14, %s2982_s14 }
  0x3f   :  { %p2989_p2 = por %p2988_p1, %p2987_p0 }
  0x41   :  { %p2990_p3 = pnand %p2989_p2, %p2983_p13 }
  0x43   :  { %2993 = shalt.err (!%p2990_p3)
}
  0x44   :  { %54 = dma.hbm_to_vmem [thread:$0]  %s3599_s2, 2048, %s3169_s17, [#allocation6], %s3072_s21, %s3072_s21, %s3073_s22  }
  0x45   :  { %s3076_s16 = smov [#allocation10]   ;;  %s3077_s19 = smov [#allocation11]  }
  0x46   :  { %s74_s18 = sshll.u32 %s3076_s16, 4  ;;  %s88_s20 = sshll.u32 %s3077_s19, 4  ;;  %s75_s18 = int_to_ptr.vmem [resolvable:$true] %s74_s18  ;;  %s3206_s20 = int_to_ptr.vmem [resolvable:$true] %s88_s20 }
  0x47   :  { %s2994_s25 = scalar_lea.hbm %s3602_s5, 2048 }
  0x48   :  { %p2995_p4 = scmp.ne.s32.totalorder %s3602_s5, %s2994_s25  ;;  %p2998_p5 = scmp.lt.u32.totalorder %s2994_s25, %s3602_s5 }
  0x4a   :  { %p3000_p6 = pnand %p2998_p5, %p2995_p4 }
  0x4c   :  { %3003 = shalt.err (!%p3000_p6)
}
  0x4d   :  { %s3004_s2 = scalar_lea.vmem %s75_s18, 2048  ;;  %p3009_p8 = scmp.lt.s32.totalorder %s75_s18, %s75_s18 }
  0x4e   :  { %p3005_p7 = scmp.ne.s32.totalorder %s75_s18, %s3004_s2  ;;  %p3010_p9 = scmp.lt.s32.totalorder %s3004_s2, %s3004_s2 }
  0x50   :  { %p3011_p10 = por %p3010_p9, %p3009_p8 }
  0x52   :  { %p3012_p11 = pnand %p3011_p10, %p3005_p7 }
  0x54   :  { %3015 = shalt.err (!%p3012_p11)
}
  0x55   :  { %80 = dma.hbm_to_vmem [thread:$0]  %s3602_s5, 2048, %s75_s18, [#allocation9], %s3072_s21, %s3072_s21, %s3073_s22  }
  0x56   :  { %s3016_s11 = scalar_lea.hbm %s3604_s7, 2048 }
  0x57   :  { %p3017_p12 = scmp.ne.s32.totalorder %s3604_s7, %s3016_s11  ;;  %p3020_p13 = scmp.lt.u32.totalorder %s3016_s11, %s3604_s7 }
  0x59   :  { %p3022_p0 = pnand %p3020_p13, %p3017_p12 }
  0x5b   :  { %3025 = shalt.err (!%p3022_p0)
}
  0x5c   :  { %s3026_s0 = scalar_lea.vmem %s3206_s20, 2048  ;;  %p3031_p2 = scmp.lt.s32.totalorder %s3206_s20, %s3206_s20 }
  0x5d   :  { %p3027_p1 = scmp.ne.s32.totalorder %s3206_s20, %s3026_s0  ;;  %p3032_p3 = scmp.lt.s32.totalorder %s3026_s0, %s3026_s0 }
  0x5f   :  { %p3033_p4 = por %p3032_p3, %p3031_p2 }
  0x61   :  { %p3034_p5 = pnand %p3033_p4, %p3027_p1 }
  0x63   :  { %3037 = shalt.err (!%p3034_p5)
}
  0x64   :  { %94 = dma.hbm_to_vmem [thread:$0]  %s3604_s7, 2048, %s3206_s20, [#allocation12], %s3072_s21, %s3072_s21, %s3073_s22  }
  0x65   :  { %3060 = dma.done.wait [#allocation3], 1024  }
  0x66   :  { %3061 = vsyncadd [#allocation3], 4294966272 }
  0x67   :  { %3062 = dma.done.wait [#allocation6], 4096  }
  0x68   :  { %3063 = vsyncadd [#allocation6], 4294963200 }
  0x69   :  { %3064 = dma.done.wait [#allocation9], 4096  }
  0x6a   :  { %3065 = vsyncadd [#allocation9], 4294963200 }
  0x6b   :  { %3066 = dma.done.wait [#allocation12], 2048  }
  0x6c   :  { %3067 = vsyncadd [#allocation12], 4294965248  ;;  %v3078_v0 = vmov 0.0|0.0   ;;  %vm3079_vm0 = vmmov 0   ;;  %v3080_v1 = vmov 0.0   ;;  %v123_v2 = vld [vmem:[#allocation5] sm:$0xff] }
  0x6d   :  { %2498 = vmatprep.subr.bf16.mxu0 %v3078_v0  ;;  %1943 = vmatprep.mubr.msk.f32.mxu0 %vm3079_vm0, %v3080_v1  ;;  %v124_v3 = vld [vmem:[#allocation5 + $0x8] sm:$0xff]  ;;  %v125_v4 = vld [vmem:[#allocation5 + $0x10] sm:$0xff]  ;;  %v126_v6 = vld [vmem:[#allocation5 + $0x18] sm:$0xff] }
  0x6e   :  { %v2442_v5 = vpack.c.bf16 %v124_v3, %v123_v2  ;;  %v2446_v7 = vpack.c.bf16 %v126_v6, %v125_v4  ;;  %v127_v8 = vld [vmem:[#allocation5 + $0x20] sm:$0xff]  ;;  %v128_v9 = vld [vmem:[#allocation5 + $0x28] sm:$0xff]  ;;  %v129_v11 = vld [vmem:[#allocation5 + $0x30] sm:$0xff] }
  0x6f   :  { %v2450_v10 = vpack.c.bf16 %v128_v9, %v127_v8  ;;  %v115_v12 = vld [vmem:[#allocation2] sm:$0xff]  ;;  %v130_v13 = vld [vmem:[#allocation5 + $0x38] sm:$0xff]  ;;  %v252_v15 = vld [vmem:[#allocation7 + $0x8] sm:$0xff] }
  0x70   :  { %2443 = vmatprep.subr.bf16.mxu1 %v2442_v5  ;;  %1864 = vmatprep.mubr.f32.mxu1 %v115_v12  ;;  %v251_v14 = vld [vmem:[#allocation7] sm:$0xff]  ;;  %v253_v17 = vld [vmem:[#allocation7 + $0x10] sm:$0xff]  ;;  %v254_v18 = vld [vmem:[#allocation7 + $0x18] sm:$0xff]  ;;  %v2454_v19 = vpack.c.bf16 %v130_v13, %v129_v11 }
  0x71   :  { %2445 = vmatpush3.bf16.msra.mxu1 %v2442_v5  ;;  %v3246_v16 = vpack.c.bf16 %v252_v15, %v251_v14  ;;  %v131_v20 = vld [vmem:[#allocation5 + $0x40] sm:$0xff]  ;;  %v132_v21 = vld [vmem:[#allocation5 + $0x48] sm:$0xff]  ;;  %v3250_v22 = vpack.c.bf16 %v254_v18, %v253_v17  ;;  %v133_v26 = vld [vmem:[#allocation5 + $0x50] sm:$0xff] }
  0x72   :  { %2447 = vmatprep.subr.bf16.mxu1 %v2446_v7  ;;  %v255_v23 = vld [vmem:[#allocation7 + $0x20] sm:$0xff]  ;;  %v256_v24 = vld [vmem:[#allocation7 + $0x28] sm:$0xff]  ;;  %v2458_v25 = vpack.c.bf16 %v132_v21, %v131_v20  ;;  %v134_v27 = vld [vmem:[#allocation5 + $0x58] sm:$0xff] }
  0x73   :  { %2500 = vmatpush3.bf16.msra.mxu0 %v3246_v16  ;;  %v3254_v28 = vpack.c.bf16 %v256_v24, %v255_v23  ;;  %v257_v29 = vld [vmem:[#allocation7 + $0x30] sm:$0xff]  ;;  %v258_v30 = vld [vmem:[#allocation7 + $0x38] sm:$0xff]  ;;  %v2462_v31 = vpack.c.bf16 %v134_v27, %v133_v26  ;;  %v135_v32 = vld [vmem:[#allocation5 + $0x60] sm:$0xff] }
  0x74   :  { %2501 = vmatprep.subr.bf16.mxu0 %v3078_v0  ;;  %v136_v33 = vld [vmem:[#allocation5 + $0x68] sm:$0xff]  ;;  %v3258_v34 = vpack.c.bf16 %v258_v30, %v257_v29  ;;  %v259_v35 = vld [vmem:[#allocation7 + $0x40] sm:$0xff]  ;;  %v137_v38 = vld [vmem:[#allocation5 + $0x70] sm:$0xff] }
  0x75   :  { %2449 = vmatpush3.bf16.msra.mxu1 %v2446_v7  ;;  %v260_v36 = vld [vmem:[#allocation7 + $0x48] sm:$0xff]  ;;  %v2466_v37 = vpack.c.bf16 %v136_v33, %v135_v32  ;;  %v138_v39 = vld [vmem:[#allocation5 + $0x78] sm:$0xff]  ;;  %v261_v41 = vld [vmem:[#allocation7 + $0x50] sm:$0xff] }
  0x76   :  { %2451 = vmatprep.subr.bf16.mxu1 %v2450_v10  ;;  %v3262_v40 = vpack.c.bf16 %v260_v36, %v259_v35  ;;  %v262_v42 = vld [vmem:[#allocation7 + $0x58] sm:$0xff]  ;;  %v2470_v43 = vpack.c.bf16 %v138_v39, %v137_v38  ;;  %v263_v45 = vld [vmem:[#allocation7 + $0x60] sm:$0xff]  ;;  %v264_v46 = vld [vmem:[#allocation7 + $0x68] sm:$0xff] }
  0x77   :  { %2503 = vmatpush3.bf16.msra.mxu0 %v3250_v22  ;;  %v3266_v44 = vpack.c.bf16 %v262_v42, %v261_v41  ;;  %v3270_v47 = vpack.c.bf16 %v264_v46, %v263_v45  ;;  %v116_v48 = vld [vmem:[#allocation2 + $0x8] sm:$0xff]  ;;  %v265_v49 = vld [vmem:[#allocation7 + $0x70] sm:$0xff]  ;;  %v266_v50 = vld [vmem:[#allocation7 + $0x78] sm:$0xff] }
  0x78   :  { %2504 = vmatprep.subr.bf16.mxu0 %v3078_v0  ;;  %v117_v51 = vld [vmem:[#allocation2 + $0x10] sm:$0xff]  ;;  %v3275_v52 = vpack.c.bf16 %v266_v50, %v265_v49  ;;  %v118_v53 = vld [vmem:[#allocation2 + $0x18] sm:$0xff]  ;;  %v119_v54 = vld [vmem:[#allocation2 + $0x20] sm:$0xff] }
  0x79   :  { %2453 = vmatpush3.bf16.msra.mxu1 %v2450_v10  ;;  %v120_v55 = vld [vmem:[#allocation2 + $0x28] sm:$0xff]  ;;  %v121_v56 = vld [vmem:[#allocation2 + $0x30] sm:$0xff]  ;;  %v122_v57 = vld [vmem:[#allocation2 + $0x38] sm:$0xff] }
  0x7a   :  { %2455 = vmatprep.subr.bf16.mxu1 %v2454_v19  ;;  %v1528_v58 = vld [vmem:[%s3600_s3] ss:$0 sm:$0xff]  ;;  %v844_v38 = vld [vmem:[#allocation8 + $0x8] sm:$0xff]  ;;  %v846_v41 = vld [vmem:[#allocation8 + $0x18] sm:$0xff] }
  0x7b   :  { %2506 = vmatpush3.bf16.msra.mxu0 %v3254_v28  ;;  %v849_v46 = vld [vmem:[#allocation8 + $0x30] sm:$0xff]  ;;  %v851_v49 = vld [vmem:[#allocation8 + $0x40] sm:$0xff]  ;;  %v852_v50 = vld [vmem:[#allocation8 + $0x48] sm:$0xff] }
  0x7c   :  { %2507 = vmatprep.subr.bf16.mxu0 %v3078_v0 }
  0x7d   :  { %2457 = vmatpush3.bf16.msra.mxu1 %v2454_v19 }
  0x7e   :  { %2459 = vmatprep.subr.bf16.mxu1 %v2458_v25 }
  0x7f   :  { %2509 = vmatpush3.bf16.msra.mxu0 %v3258_v34 }
  0x80   :  { %2510 = vmatprep.subr.bf16.mxu0 %v3078_v0 }
  0x81   :  { %2461 = vmatpush3.bf16.msra.mxu1 %v2458_v25 }
  0x82   :  { %2463 = vmatprep.subr.bf16.mxu1 %v2462_v31 }
  0x83   :  { %2512 = vmatpush3.bf16.msra.mxu0 %v3262_v40 }
  0x84   :  { %2513 = vmatprep.subr.bf16.mxu0 %v3078_v0 }
  0x85   :  { %2465 = vmatpush3.bf16.msra.mxu1 %v2462_v31 }
  0x86   :  { %2467 = vmatprep.subr.bf16.mxu1 %v2466_v37 }
  0x87   :  { %2515 = vmatpush3.bf16.msra.mxu0 %v3266_v44 }
  0x88   :  { %2516 = vmatprep.subr.bf16.mxu0 %v3078_v0 }
  0x89   :  { %2469 = vmatpush3.bf16.msra.mxu1 %v2466_v37  ;;  %v843_v37 = vld [vmem:[#allocation8] sm:$0xff] }
  0x8a   :  { %2471 = vmatprep.subr.bf16.mxu1 %v2470_v43  ;;  %v2667_v39 = vpack.c.bf16 %v844_v38, %v843_v37 }
  0x8b   :  { %2518 = vmatpush3.bf16.msra.mxu0 %v3270_v47 }
  0x8c   :  { %2519 = vmatprep.subr.bf16.mxu0 %v3078_v0 }
  0x8d   :  { %2473 = vmatpush3.bf16.msra.mxu1 %v2470_v43  ;;  %v847_v43 = vld [vmem:[#allocation8 + $0x20] sm:$0xff] }
  0x8e   :  { %2474 = vmatprep.subr.bf16.mxu1 %v3078_v0 }
  0x8f   :  { %2521 = vmatpush3.bf16.msra.mxu0 %v3275_v52 }
  0x90   :  { %1865 = vmatmul.mubr.f32.vlgmr.msra.gmra.mrb[0].mxu1 %v116_v48  ;;  %2546 = vmatprep.subr.bf16.mxu0 %v3078_v0 }
  0x91   :  { %2476 = vmatpush3.bf16.msra.mxu1 %v3246_v16  ;;  %1867 = vmatprep.mubr.f32.mxu1 %v117_v51  ;;  %v2679_v51 = vpack.c.bf16 %v852_v50, %v851_v49 }
  0x92   :  { %2477 = vmatprep.subr.bf16.mxu1 %v3078_v0 }
  0x94   :  { %1868 = vmatmul.mubr.f32.gmra.mrb[2].mxu1 %v118_v53 }
  0x95   :  { %2479 = vmatpush3.bf16.msra.mxu1 %v3250_v22  ;;  %1870 = vmatprep.mubr.f32.mxu1 %v119_v54 }
  0x96   :  { %2480 = vmatprep.subr.bf16.mxu1 %v3078_v0 }
  0x98   :  { %1871 = vmatmul.mubr.f32.gmra.mrb[4].mxu1 %v120_v55  ;;  %v936_v55 = vld [vmem:[#allocation10] sm:$0xff] }
  0x99   :  { %2482 = vmatpush3.bf16.msra.mxu1 %v3254_v28  ;;  %1873 = vmatprep.mubr.f32.mxu1 %v121_v56  ;;  %v937_v56 = vld [vmem:[#allocation10 + $0x8] sm:$0xff] }
  0x9a   :  { %2483 = vmatprep.subr.bf16.mxu1 %v3078_v0 }
  0x9c   :  { %1874 = vmatmul.mubr.f32.gmra.mrb[6].mxu1 %v122_v57  ;;  %v3430_v57 = vpack.c.bf16 %v937_v56, %v936_v55  ;;  %v1388_v56 = vld [vmem:[#allocation11 + $0x20] sm:$0xff] }
  0x9d   :  { %2485 = vmatpush3.bf16.msra.mxu1 %v3258_v34  ;;  %1908 = vmatprep.mubr.msk.f32.mxu1 %vm3079_vm0, %v3080_v1 }
  0x9e   :  { %2486 = vmatprep.subr.bf16.mxu1 %v3078_v0 }
  0xa1   :  { %2488 = vmatpush3.bf16.msra.mxu1 %v3262_v40 }
  0xa2   :  { %2489 = vmatprep.subr.bf16.mxu1 %v3078_v0 }
  0xa5   :  { %2491 = vmatpush3.bf16.msra.mxu1 %v3266_v44 }
  0xa6   :  { %2492 = vmatprep.subr.bf16.mxu1 %v3078_v0 }
  0xa9   :  { %2494 = vmatpush3.bf16.msra.mxu1 %v3270_v47 }
  0xaa   :  { %2495 = vmatprep.subr.bf16.mxu1 %v3078_v0 }
  0xad   :  { %2497 = vmatpush3.bf16.msra.mxu1 %v3275_v52 }
  0xae   :  { %2522 = vmatprep.subr.bf16.mxu1 %v3078_v0 }
  0xb0   :  { %1909 = vmatmul.mubr.f32.vlgmr.msra.gmra.mrb[8].mxu1 %v3080_v1 }
  0xb1   :  { %2524 = vmatpush3.bf16.msra.mxu1 %v3246_v16  ;;  %1978 = vmatprep.mubr.msk.f32.mxu1 %vm3079_vm0, %v3080_v1 }
  0xb2   :  { %2525 = vmatprep.subr.bf16.mxu1 %v3078_v0 }
  0xb5   :  { %2527 = vmatpush3.bf16.msra.mxu1 %v3250_v22 }
  0xb6   :  { %2528 = vmatprep.subr.bf16.mxu1 %v3078_v0 }
  0xb9   :  { %2530 = vmatpush3.bf16.msra.mxu1 %v3254_v28 }
  0xba   :  { %2531 = vmatprep.subr.bf16.mxu1 %v3078_v0 }
  0xbd   :  { %2533 = vmatpush3.bf16.msra.mxu1 %v3258_v34 }
  0xbe   :  { %2534 = vmatprep.subr.bf16.mxu1 %v3078_v0 }
  0xc1   :  { %2536 = vmatpush3.bf16.msra.mxu1 %v3262_v40 }
  0xc2   :  { %2537 = vmatprep.subr.bf16.mxu1 %v3078_v0 }
  0xc5   :  { %2539 = vmatpush3.bf16.msra.mxu1 %v3266_v44 }
  0xc6   :  { %2540 = vmatprep.subr.bf16.mxu1 %v3078_v0 }
  0xc9   :  { %2542 = vmatpush3.bf16.msra.mxu1 %v3270_v47 }
  0xca   :  { %2543 = vmatprep.subr.bf16.mxu1 %v3078_v0 }
  0xcd   :  { %2545 = vmatpush3.bf16.msra.mxu1 %v3275_v52 }
  0xce   :  { %2570 = vmatprep.subr.bf16.mxu1 %v3078_v0 }
 0x163   :  { %v1866_v59 = vpop.f32.mrb[0].mxu1 }
 0x164   :  { %v218_v60 = vadd.f32 %v1866_v59, %v1528_v58  ;;  %v212_v61 = vpop.f32.mrb[1].mxu1  ;;  %v939_v59 = vld [vmem:[#allocation10 + $0x18] sm:$0xff] }
 0x165   :  { %v213_v12 = vadd.f32 %v1528_v58, %v212_v61 }
 0x167   :  { %v1869_v62 = vpop.f32.mrb[2].mxu1 }
 0x168   :  { %v3319_v63 = vadd.f32 %v1869_v62, %v1528_v58  ;;  %v222_v2 = vpop.f32.mrb[3].mxu1  ;;  %v940_v62 = vld [vmem:[#allocation10 + $0x20] sm:$0xff] }
 0x169   :  { %v223_v3 = vadd.f32 %v1528_v58, %v222_v2 }
 0x16b   :  { %v1872_v4 = vpop.f32.mrb[4].mxu1 }
 0x16c   :  { %v3321_v5 = vadd.f32 %v1872_v4, %v1528_v58  ;;  %v232_v6 = vpop.f32.mrb[5].mxu1  ;;  %v943_v4 = vld [vmem:[#allocation10 + $0x38] sm:$0xff] }
 0x16d   :  { %v3323_v7 = vadd.f32 %v1528_v58, %v232_v6  ;;  %v944_v6 = vld [vmem:[#allocation10 + $0x40] sm:$0xff] }
 0x16f   :  { %v1875_v8 = vpop.f32.mrb[6].mxu1 }
 0x170   :  { %v3325_v9 = vadd.f32 %v1875_v8, %v1528_v58  ;;  %v242_v10 = vpop.f32.mrb[7].mxu1 }
 0x171   :  { %v3327_v11 = vadd.f32 %v1528_v58, %v242_v10  ;;  %v938_v58 = vld [vmem:[#allocation10 + $0x10] sm:$0xff] }
 0x172   :  { %v3433_v61 = vpack.c.bf16 %v939_v59, %v938_v58  ;;  %v853_v10 = vld [vmem:[#allocation8 + $0x50] sm:$0xff]  ;;  %v1391_v59 = vld [vmem:[#allocation11 + $0x38] sm:$0xff] }
 0x173   :  { %v1390_v58 = vld [vmem:[#allocation11 + $0x30] sm:$0xff] }
 0x183   :  { %v333_v13 = vpop.f32.mrb[8].mxu1 }
 0x184   :  { %v337_v14 = vadd.f32 %v333_v13, %v213_v12  ;;  %v1910_v15 = vpop.f32.mrb[9].mxu1  ;;  %v946_v12 = vld [vmem:[#allocation10 + $0x50] sm:$0xff] }
 0x186   :  { %2878 = vtanh.f32 %v337_v14  ;;  %v947_v14 = vld [vmem:[#allocation10 + $0x58] sm:$0xff] }
 0x187   :  { %v3452_v15 = vpack.c.bf16 %v947_v14, %v946_v12 }
 0x190   :  { %v2879_v17 = vpop.eup %2878 }
 0x191   :  { %1944 = vmatmul.mubr.f32.vlgmr.msra.gmra.mrb[0].mxu0 %v2879_v17  ;;  %v855_v17 = vld [vmem:[#allocation8 + $0x60] sm:$0xff] }
 0x192   :  { %2548 = vmatpush3.bf16.msra.mxu0 %v3246_v16  ;;  %2013 = vmatprep.mubr.msk.f32.mxu0 %vm3079_vm0, %v3080_v1 }
 0x193   :  { %2549 = vmatprep.subr.bf16.mxu0 %v3078_v0 }
 0x196   :  { %2551 = vmatpush3.bf16.msra.mxu0 %v3250_v22 }
 0x197   :  { %2552 = vmatprep.subr.bf16.mxu0 %v3078_v0 }
 0x19a   :  { %2554 = vmatpush3.bf16.msra.mxu0 %v3254_v28 }
 0x19b   :  { %2555 = vmatprep.subr.bf16.mxu0 %v3078_v0 }
 0x19e   :  { %2557 = vmatpush3.bf16.msra.mxu0 %v3258_v34 }
 0x19f   :  { %2558 = vmatprep.subr.bf16.mxu0 %v3078_v0 }
 0x1a2   :  { %2560 = vmatpush3.bf16.msra.mxu0 %v3262_v40 }
 0x1a3   :  { %2561 = vmatprep.subr.bf16.mxu0 %v3078_v0 }
 0x1a6   :  { %2563 = vmatpush3.bf16.msra.mxu0 %v3266_v44 }
 0x1a7   :  { %2564 = vmatprep.subr.bf16.mxu0 %v3078_v0 }
 0x1aa   :  { %2566 = vmatpush3.bf16.msra.mxu0 %v3270_v47 }
 0x1ab   :  { %2567 = vmatprep.subr.bf16.mxu0 %v3078_v0 }
 0x1ae   :  { %2569 = vmatpush3.bf16.msra.mxu0 %v3275_v52 }
 0x1af   :  { %2594 = vmatprep.subr.bf16.mxu0 %v3078_v0 }
 0x264   :  { %v405_v18 = vpop.f32.mrb[0].mxu0 }
 0x265   :  { %v409_v19 = vadd.f32 %v405_v18, %v218_v60  ;;  %v1945_v20 = vpop.f32.mrb[1].mxu0  ;;  %v856_v18 = vld [vmem:[#allocation8 + $0x68] sm:$0xff] }
 0x266   :  { %v2685_v20 = vpack.c.bf16 %v856_v18, %v855_v17  ;;  %v1530_v17 = vld [vmem:[%s3605_s8] ss:$0 sm:$0xff]  ;;  %s3081_s8 = smov [#allocation13]  }
 0x267   :  { %2880 = vtanh.f32 %v409_v19  ;;  %v948_v19 = vld [vmem:[#allocation10 + $0x60] sm:$0xff]  ;;  %s1513_s20 = sshll.u32 %s3081_s8, 4  ;;  %s1514_s20 = int_to_ptr.vmem [resolvable:$true] %s1513_s20 }
 0x268   :  { %s3038_s23 = scalar_lea.vmem %s1514_s20, 768  ;;  %p3043_p7 = scmp.lt.s32.totalorder %s1514_s20, %s1514_s20 }
 0x269   :  { %p3039_p6 = scmp.ne.s32.totalorder %s1514_s20, %s3038_s23  ;;  %p3044_p8 = scmp.lt.s32.totalorder %s3038_s23, %s3038_s23 }
 0x26b   :  { %p3045_p9 = por %p3044_p8, %p3043_p7 }
 0x26d   :  { %p3046_p10 = pnand %p3045_p9, %p3039_p6 }
 0x271   :  { %v2881_v21 = vpop.eup %2880 }
 0x272   :  { %1979 = vmatmul.mubr.f32.vlgmr.msra.gmra.mrb[10].mxu1 %v2881_v21  ;;  %v949_v21 = vld [vmem:[#allocation10 + $0x68] sm:$0xff] }
 0x273   :  { %2572 = vmatpush3.bf16.msra.mxu1 %v3246_v16  ;;  %2048 = vmatprep.mubr.msk.f32.mxu1 %vm3079_vm0, %v3080_v1 }
 0x274   :  { %2573 = vmatprep.subr.bf16.mxu1 %v3078_v0 }
 0x277   :  { %2575 = vmatpush3.bf16.msra.mxu1 %v3250_v22 }
 0x278   :  { %2576 = vmatprep.subr.bf16.mxu1 %v3078_v0 }
 0x27b   :  { %2578 = vmatpush3.bf16.msra.mxu1 %v3254_v28 }
 0x27c   :  { %2579 = vmatprep.subr.bf16.mxu1 %v3078_v0 }
 0x27f   :  { %2581 = vmatpush3.bf16.msra.mxu1 %v3258_v34 }
 0x280   :  { %2582 = vmatprep.subr.bf16.mxu1 %v3078_v0 }
 0x283   :  { %2584 = vmatpush3.bf16.msra.mxu1 %v3262_v40 }
 0x284   :  { %2585 = vmatprep.subr.bf16.mxu1 %v3078_v0 }
 0x287   :  { %2587 = vmatpush3.bf16.msra.mxu1 %v3266_v44 }
 0x288   :  { %2588 = vmatprep.subr.bf16.mxu1 %v3078_v0 }
 0x28b   :  { %2590 = vmatpush3.bf16.msra.mxu1 %v3270_v47 }
 0x28c   :  { %2591 = vmatprep.subr.bf16.mxu1 %v3078_v0 }
 0x28f   :  { %2593 = vmatpush3.bf16.msra.mxu1 %v3275_v52 }
 0x290   :  { %2618 = vmatprep.subr.bf16.mxu1 %v3078_v0 }
 0x345   :  { %v477_v23 = vpop.f32.mrb[10].mxu1 }
 0x346   :  { %v481_v24 = vadd.f32 %v477_v23, %v223_v3  ;;  %v1980_v25 = vpop.f32.mrb[11].mxu1  ;;  %v942_v3 = vld [vmem:[#allocation10 + $0x30] sm:$0xff] }
 0x347   :  { %v857_v23 = vld [vmem:[#allocation8 + $0x70] sm:$0xff]  ;;  %v3457_v25 = vpack.c.bf16 %v949_v21, %v948_v19 }
 0x348   :  { %2882 = vtanh.f32 %v481_v24  ;;  %v858_v24 = vld [vmem:[#allocation8 + $0x78] sm:$0xff] }
 0x352   :  { %v2883_v26 = vpop.eup %2882 }
 0x353   :  { %2014 = vmatmul.mubr.f32.vlgmr.msra.gmra.mrb[2].mxu0 %v2883_v26  ;;  %v950_v26 = vld [vmem:[#allocation10 + $0x70] sm:$0xff] }
 0x354   :  { %2596 = vmatpush3.bf16.msra.mxu0 %v3246_v16  ;;  %2083 = vmatprep.mubr.msk.f32.mxu0 %vm3079_vm0, %v3080_v1 }
 0x355   :  { %2597 = vmatprep.subr.bf16.mxu0 %v3078_v0 }
 0x358   :  { %2599 = vmatpush3.bf16.msra.mxu0 %v3250_v22 }
 0x359   :  { %2600 = vmatprep.subr.bf16.mxu0 %v3078_v0 }
 0x35c   :  { %2602 = vmatpush3.bf16.msra.mxu0 %v3254_v28 }
 0x35d   :  { %2603 = vmatprep.subr.bf16.mxu0 %v3078_v0 }
 0x360   :  { %2605 = vmatpush3.bf16.msra.mxu0 %v3258_v34 }
 0x361   :  { %2606 = vmatprep.subr.bf16.mxu0 %v3078_v0 }
 0x364   :  { %2608 = vmatpush3.bf16.msra.mxu0 %v3262_v40 }
 0x365   :  { %2609 = vmatprep.subr.bf16.mxu0 %v3078_v0 }
 0x368   :  { %2611 = vmatpush3.bf16.msra.mxu0 %v3266_v44 }
 0x369   :  { %2612 = vmatprep.subr.bf16.mxu0 %v3078_v0 }
 0x36c   :  { %2614 = vmatpush3.bf16.msra.mxu0 %v3270_v47 }
 0x36d   :  { %2615 = vmatprep.subr.bf16.mxu0 %v3078_v0 }
 0x370   :  { %2617 = vmatpush3.bf16.msra.mxu0 %v3275_v52 }
 0x371   :  { %2642 = vmatprep.subr.bf16.mxu0 %v3078_v0 }
 0x426   :  { %v549_v27 = vpop.f32.mrb[2].mxu0 }
 0x427   :  { %v553_v29 = vadd.f32 %v549_v27, %v3319_v63  ;;  %v2015_v30 = vpop.f32.mrb[3].mxu0  ;;  %v941_v63 = vld [vmem:[#allocation10 + $0x28] sm:$0xff]  ;;  %v951_v27 = vld [vmem:[#allocation10 + $0x78] sm:$0xff] }
 0x428   :  { %v3439_v2 = vpack.c.bf16 %v941_v63, %v940_v62  ;;  %v3461_v30 = vpack.c.bf16 %v951_v27, %v950_v26  ;;  %v1393_v62 = vld [vmem:[#allocation11 + $0x48] sm:$0xff] }
 0x429   :  { %2884 = vtanh.f32 %v553_v29  ;;  %v2688_v29 = vpack.c.bf16 %v858_v24, %v857_v23 }
 0x433   :  { %v2885_v31 = vpop.eup %2884 }
 0x434   :  { %2049 = vmatmul.mubr.f32.vlgmr.msra.gmra.mrb[12].mxu1 %v2885_v31 }
 0x435   :  { %2620 = vmatpush3.bf16.msra.mxu1 %v3246_v16  ;;  %2118 = vmatprep.mubr.msk.f32.mxu1 %vm3079_vm0, %v3080_v1 }
 0x436   :  { %2621 = vmatprep.subr.bf16.mxu1 %v3078_v0 }
 0x439   :  { %2623 = vmatpush3.bf16.msra.mxu1 %v3250_v22 }
 0x43a   :  { %2624 = vmatprep.subr.bf16.mxu1 %v3078_v0 }
 0x43d   :  { %2626 = vmatpush3.bf16.msra.mxu1 %v3254_v28 }
 0x43e   :  { %2627 = vmatprep.subr.bf16.mxu1 %v3078_v0 }
 0x441   :  { %2629 = vmatpush3.bf16.msra.mxu1 %v3258_v34 }
 0x442   :  { %2630 = vmatprep.subr.bf16.mxu1 %v3078_v0 }
 0x445   :  { %2632 = vmatpush3.bf16.msra.mxu1 %v3262_v40 }
 0x446   :  { %2633 = vmatprep.subr.bf16.mxu1 %v3078_v0 }
 0x449   :  { %2635 = vmatpush3.bf16.msra.mxu1 %v3266_v44 }
 0x44a   :  { %2636 = vmatprep.subr.bf16.mxu1 %v3078_v0 }
 0x44d   :  { %2638 = vmatpush3.bf16.msra.mxu1 %v3270_v47 }
 0x44e   :  { %2639 = vmatprep.subr.bf16.mxu1 %v3078_v0 }
 0x451   :  { %2641 = vmatpush3.bf16.msra.mxu1 %v3275_v52 }
 0x452   :  { %2666 = vmatprep.subr.bf16.mxu1 %v3078_v0 }
 0x507   :  { %v621_v32 = vpop.f32.mrb[12].mxu1 }
 0x508   :  { %v625_v33 = vadd.f32 %v621_v32, %v3323_v7  ;;  %v2050_v35 = vpop.f32.mrb[13].mxu1  ;;  %v945_v7 = vld [vmem:[#allocation10 + $0x48] sm:$0xff] }
 0x509   :  { %v3447_v8 = vpack.c.bf16 %v945_v7, %v944_v6  ;;  %v1397_v6 = vld [vmem:[#allocation11 + $0x68] sm:$0xff] }
 0x50a   :  { %2886 = vtanh.f32 %v625_v33 }
 0x514   :  { %v2887_v36 = vpop.eup %2886 }
 0x515   :  { %2084 = vmatmul.mubr.f32.vlgmr.msra.gmra.mrb[4].mxu0 %v2887_v36 }
 0x516   :  { %2644 = vmatpush3.bf16.msra.mxu0 %v3246_v16  ;;  %2153 = vmatprep.mubr.msk.f32.mxu0 %vm3079_vm0, %v3080_v1 }
 0x517   :  { %2645 = vmatprep.subr.bf16.mxu0 %v3078_v0 }
 0x51a   :  { %2647 = vmatpush3.bf16.msra.mxu0 %v3250_v22 }
 0x51b   :  { %2648 = vmatprep.subr.bf16.mxu0 %v3078_v0 }
 0x51e   :  { %2650 = vmatpush3.bf16.msra.mxu0 %v3254_v28 }
 0x51f   :  { %2651 = vmatprep.subr.bf16.mxu0 %v3078_v0 }
 0x522   :  { %2653 = vmatpush3.bf16.msra.mxu0 %v3258_v34 }
 0x523   :  { %2654 = vmatprep.subr.bf16.mxu0 %v3078_v0 }
 0x526   :  { %2656 = vmatpush3.bf16.msra.mxu0 %v3262_v40  ;;  %v845_v40 = vld [vmem:[#allocation8 + $0x10] sm:$0xff] }
 0x527   :  { %2657 = vmatprep.subr.bf16.mxu0 %v3078_v0  ;;  %v2670_v42 = vpack.c.bf16 %v846_v41, %v845_v40 }
 0x52a   :  { %2659 = vmatpush3.bf16.msra.mxu0 %v3266_v44  ;;  %v848_v44 = vld [vmem:[#allocation8 + $0x28] sm:$0xff] }
 0x52b   :  { %2660 = vmatprep.subr.bf16.mxu0 %v3078_v0  ;;  %v2673_v45 = vpack.c.bf16 %v848_v44, %v847_v43 }
 0x52e   :  { %2662 = vmatpush3.bf16.msra.mxu0 %v3270_v47  ;;  %v850_v47 = vld [vmem:[#allocation8 + $0x38] sm:$0xff] }
 0x52f   :  { %2663 = vmatprep.subr.bf16.mxu0 %v3078_v0  ;;  %v2676_v48 = vpack.c.bf16 %v850_v47, %v849_v46  ;;  %v1385_v47 = vld [vmem:[#allocation11 + $0x8] sm:$0xff] }
 0x532   :  { %2665 = vmatpush3.bf16.msra.mxu0 %v3275_v52 }
 0x533   :  { %2690 = vmatprep.subr.bf16.mxu0 %v3078_v0 }
 0x5e8   :  { %v693_v16 = vpop.f32.mrb[4].mxu0 }
 0x5e9   :  { %v697_v22 = vadd.f32 %v693_v16, %v3321_v5  ;;  %v2085_v28 = vpop.f32.mrb[5].mxu0  ;;  %v3443_v5 = vpack.c.bf16 %v943_v4, %v942_v3  ;;  %v1395_v3 = vld [vmem:[#allocation11 + $0x58] sm:$0xff] }
 0x5eb   :  { %2888 = vtanh.f32 %v697_v22 }
 0x5f5   :  { %v2889_v34 = vpop.eup %2888 }
 0x5f6   :  { %2119 = vmatmul.mubr.f32.vlgmr.msra.gmra.mrb[14].mxu1 %v2889_v34 }
 0x5f7   :  { %2188 = vmatprep.mubr.msk.f32.mxu1 %vm3079_vm0, %v3080_v1  ;;  %2668 = vmatpush3.bf16.msra.mxu1 %v2667_v39 }
 0x5f8   :  { %2669 = vmatprep.subr.bf16.mxu1 %v3078_v0 }
 0x5fb   :  { %2671 = vmatpush3.bf16.msra.mxu1 %v2670_v42 }
 0x5fc   :  { %2672 = vmatprep.subr.bf16.mxu1 %v3078_v0 }
 0x5ff   :  { %2674 = vmatpush3.bf16.msra.mxu1 %v2673_v45 }
 0x600   :  { %2675 = vmatprep.subr.bf16.mxu1 %v3078_v0 }
 0x603   :  { %2677 = vmatpush3.bf16.msra.mxu1 %v2676_v48 }
 0x604   :  { %2678 = vmatprep.subr.bf16.mxu1 %v3078_v0 }
 0x607   :  { %2680 = vmatpush3.bf16.msra.mxu1 %v2679_v51 }
 0x608   :  { %2681 = vmatprep.subr.bf16.mxu1 %v3078_v0 }
 0x6c9   :  { %v765_v52 = vpop.f32.mrb[14].mxu1 }
 0x6ca   :  { %v769_v53 = vadd.f32 %v765_v52, %v3327_v11  ;;  %v2120_v54 = vpop.f32.mrb[15].mxu1  ;;  %v854_v11 = vld [vmem:[#allocation8 + $0x58] sm:$0xff]  ;;  %v1386_v52 = vld [vmem:[#allocation11 + $0x10] sm:$0xff] }
 0x6cb   :  { %v2682_v13 = vpack.c.bf16 %v854_v11, %v853_v10  ;;  %v1399_v10 = vld [vmem:[#allocation11 + $0x78] sm:$0xff] }
 0x6cc   :  { %2890 = vtanh.f32 %v769_v53  ;;  %v1387_v53 = vld [vmem:[#allocation11 + $0x18] sm:$0xff] }
 0x6cd   :  { %2683 = vmatpush3.bf16.msra.mxu1 %v2682_v13  ;;  %v2838_v54 = vpack.c.bf16 %v1387_v53, %v1386_v52 }
 0x6ce   :  { %2684 = vmatprep.subr.bf16.mxu1 %v3078_v0 }
 0x6d1   :  { %2686 = vmatpush3.bf16.msra.mxu1 %v2685_v20 }
 0x6d2   :  { %2687 = vmatprep.subr.bf16.mxu1 %v3078_v0 }
 0x6d5   :  { %2689 = vmatpush3.bf16.msra.mxu1 %v2688_v29 }
 0x6d6   :  { %v2891_v60 = vpop.eup %2890  ;;  %2714 = vmatprep.subr.bf16.mxu1 %v3078_v0 }
 0x6d7   :  { %2154 = vmatmul.mubr.f32.vlgmr.msra.gmra.mrb[6].mxu0 %v2891_v60  ;;  %v2846_v60 = vpack.c.bf16 %v1391_v59, %v1390_v58 }
 0x6d8   :  { %2692 = vmatpush3.bf16.msra.mxu0 %v3430_v57  ;;  %2223 = vmatprep.mubr.msk.f32.mxu0 %vm3079_vm0, %v3080_v1 }
 0x6d9   :  { %2693 = vmatprep.subr.bf16.mxu0 %v3078_v0 }
 0x6dc   :  { %2695 = vmatpush3.bf16.msra.mxu0 %v3433_v61 }
 0x6dd   :  { %2696 = vmatprep.subr.bf16.mxu0 %v3078_v0 }
 0x6e0   :  { %2698 = vmatpush3.bf16.msra.mxu0 %v3439_v2 }
 0x6e1   :  { %2699 = vmatprep.subr.bf16.mxu0 %v3078_v0 }
 0x6e4   :  { %2701 = vmatpush3.bf16.msra.mxu0 %v3443_v5 }
 0x6e5   :  { %2702 = vmatprep.subr.bf16.mxu0 %v3078_v0 }
 0x6e8   :  { %2704 = vmatpush3.bf16.msra.mxu0 %v3447_v8 }
 0x6e9   :  { %2705 = vmatprep.subr.bf16.mxu0 %v3078_v0 }
 0x6ec   :  { %2707 = vmatpush3.bf16.msra.mxu0 %v3452_v15 }
 0x6ed   :  { %2708 = vmatprep.subr.bf16.mxu0 %v3078_v0 }
 0x6f0   :  { %2710 = vmatpush3.bf16.msra.mxu0 %v3457_v25 }
 0x6f1   :  { %2711 = vmatprep.subr.bf16.mxu0 %v3078_v0 }
 0x6f4   :  { %2713 = vmatpush3.bf16.msra.mxu0 %v3461_v30 }
 0x6f5   :  { %2738 = vmatprep.subr.bf16.mxu0 %v3078_v0 }
 0x7aa   :  { %v837_v31 = vpop.f32.mrb[6].mxu0 }
 0x7ab   :  { %v841_v32 = vadd.f32 %v837_v31, %v3325_v9  ;;  %v2155_v33 = vpop.f32.mrb[7].mxu0  ;;  %v1529_v9 = vld [vmem:[%s3603_s6] ss:$0 sm:$0xff] }
 0x7ad   :  { %2892 = vtanh.f32 %v841_v32 }
 0x7b7   :  { %v2893_v35 = vpop.eup %2892 }
 0x7b8   :  { %2189 = vmatmul.mubr.f32.vlgmr.msra.gmra.mrb[16].mxu1 %v2893_v35  ;;  %2224 = vmatmul.mubr.f32.vlgmr.msra.gmra.mrb[8].mxu0 %v2893_v35 }
 0x7b9   :  { %2716 = vmatpush3.bf16.msra.mxu1 %v3430_v57  ;;  %2258 = vmatprep.mubr.msk.f32.mxu1 %vm3079_vm0, %v3080_v1 }
 0x7ba   :  { %2717 = vmatprep.subr.bf16.mxu1 %v3078_v0  ;;  %2740 = vmatpush3.bf16.msra.mxu0 %v3430_v57 }
 0x7bb   :  { %2741 = vmatprep.subr.bf16.mxu0 %v3078_v0  ;;  %2293 = vmatprep.mubr.msk.f32.mxu0 %vm3079_vm0, %v3080_v1 }
 0x7bd   :  { %2719 = vmatpush3.bf16.msra.mxu1 %v3433_v61 }
 0x7be   :  { %2720 = vmatprep.subr.bf16.mxu1 %v3078_v0  ;;  %2743 = vmatpush3.bf16.msra.mxu0 %v3433_v61 }
 0x7bf   :  { %2744 = vmatprep.subr.bf16.mxu0 %v3078_v0 }
 0x7c1   :  { %2722 = vmatpush3.bf16.msra.mxu1 %v3439_v2 }
 0x7c2   :  { %2723 = vmatprep.subr.bf16.mxu1 %v3078_v0  ;;  %2746 = vmatpush3.bf16.msra.mxu0 %v3439_v2 }
 0x7c3   :  { %2747 = vmatprep.subr.bf16.mxu0 %v3078_v0 }
 0x7c5   :  { %2725 = vmatpush3.bf16.msra.mxu1 %v3443_v5 }
 0x7c6   :  { %2726 = vmatprep.subr.bf16.mxu1 %v3078_v0  ;;  %2749 = vmatpush3.bf16.msra.mxu0 %v3443_v5 }
 0x7c7   :  { %2750 = vmatprep.subr.bf16.mxu0 %v3078_v0 }
 0x7c9   :  { %2728 = vmatpush3.bf16.msra.mxu1 %v3447_v8 }
 0x7ca   :  { %2729 = vmatprep.subr.bf16.mxu1 %v3078_v0  ;;  %2752 = vmatpush3.bf16.msra.mxu0 %v3447_v8 }
 0x7cb   :  { %2753 = vmatprep.subr.bf16.mxu0 %v3078_v0 }
 0x7cd   :  { %2731 = vmatpush3.bf16.msra.mxu1 %v3452_v15 }
 0x7ce   :  { %2732 = vmatprep.subr.bf16.mxu1 %v3078_v0  ;;  %2755 = vmatpush3.bf16.msra.mxu0 %v3452_v15 }
 0x7cf   :  { %2756 = vmatprep.subr.bf16.mxu0 %v3078_v0 }
 0x7d1   :  { %2734 = vmatpush3.bf16.msra.mxu1 %v3457_v25 }
 0x7d2   :  { %2735 = vmatprep.subr.bf16.mxu1 %v3078_v0  ;;  %2758 = vmatpush3.bf16.msra.mxu0 %v3457_v25 }
 0x7d3   :  { %2759 = vmatprep.subr.bf16.mxu0 %v3078_v0 }
 0x7d5   :  { %2737 = vmatpush3.bf16.msra.mxu1 %v3461_v30 }
 0x7d6   :  { %2761 = vmatpush3.bf16.msra.mxu0 %v3461_v30  ;;  %2762 = vmatprep.subr.bf16.mxu1 %v3078_v0 }
 0x7d7   :  { %2786 = vmatprep.subr.bf16.mxu0 %v3078_v0 }
 0x88b   :  { %v932_v36 = vpop.f32.mrb[16].mxu1  ;;  %v1018_v16 = vpop.f32.mrb[8].mxu0 }
 0x88c   :  { %v3507_v22 = vadd.f32 %v1529_v9, %v932_v36  ;;  %v2190_v28 = vpop.f32.mrb[17].mxu1  ;;  %v2225_v34 = vpop.f32.mrb[9].mxu0 }
 0x88e   :  { %v1022_v37 = vadd.f32 %v1018_v16, %v3507_v22 }
 0x890   :  { %2894 = vtanh.f32 %v1022_v37 }
 0x89a   :  { %v3510_v38 = vpop.eup %2894 }
 0x89b   :  { %2259 = vmatmul.mubr.f32.vlgmr.msra.gmra.mrb[18].mxu1 %v3510_v38 }
 0x89c   :  { %2764 = vmatpush3.bf16.msra.mxu1 %v3430_v57  ;;  %2328 = vmatprep.mubr.msk.f32.mxu1 %vm3079_vm0, %v3080_v1 }
 0x89d   :  { %2765 = vmatprep.subr.bf16.mxu1 %v3078_v0 }
 0x8a0   :  { %2767 = vmatpush3.bf16.msra.mxu1 %v3433_v61 }
 0x8a1   :  { %2768 = vmatprep.subr.bf16.mxu1 %v3078_v0 }
 0x8a4   :  { %2770 = vmatpush3.bf16.msra.mxu1 %v3439_v2 }
 0x8a5   :  { %2771 = vmatprep.subr.bf16.mxu1 %v3078_v0 }
 0x8a8   :  { %2773 = vmatpush3.bf16.msra.mxu1 %v3443_v5 }
 0x8a9   :  { %2774 = vmatprep.subr.bf16.mxu1 %v3078_v0 }
 0x8ac   :  { %2776 = vmatpush3.bf16.msra.mxu1 %v3447_v8 }
 0x8ad   :  { %2777 = vmatprep.subr.bf16.mxu1 %v3078_v0 }
 0x8b0   :  { %2779 = vmatpush3.bf16.msra.mxu1 %v3452_v15 }
 0x8b1   :  { %2780 = vmatprep.subr.bf16.mxu1 %v3078_v0 }
 0x8b4   :  { %2782 = vmatpush3.bf16.msra.mxu1 %v3457_v25 }
 0x8b5   :  { %2783 = vmatprep.subr.bf16.mxu1 %v3078_v0 }
 0x8b8   :  { %2785 = vmatpush3.bf16.msra.mxu1 %v3461_v30 }
 0x8b9   :  { %2810 = vmatprep.subr.bf16.mxu1 %v3078_v0 }
 0x96e   :  { %v1090_v39 = vpop.f32.mrb[18].mxu1 }
 0x96f   :  { %v1094_v40 = vadd.f32 %v1090_v39, %v3507_v22  ;;  %v2260_v41 = vpop.f32.mrb[19].mxu1 }
 0x971   :  { %2896 = vtanh.f32 %v1094_v40 }
 0x97b   :  { %v3532_v42 = vpop.eup %2896 }
 0x97c   :  { %2294 = vmatmul.mubr.f32.vlgmr.msra.gmra.mrb[10].mxu0 %v3532_v42 }
 0x97d   :  { %2788 = vmatpush3.bf16.msra.mxu0 %v3430_v57  ;;  %2363 = vmatprep.mubr.msk.f32.mxu0 %vm3079_vm0, %v3080_v1 }
 0x97e   :  { %2789 = vmatprep.subr.bf16.mxu0 %v3078_v0 }
 0x981   :  { %2791 = vmatpush3.bf16.msra.mxu0 %v3433_v61 }
 0x982   :  { %2792 = vmatprep.subr.bf16.mxu0 %v3078_v0 }
 0x985   :  { %2794 = vmatpush3.bf16.msra.mxu0 %v3439_v2 }
 0x986   :  { %2795 = vmatprep.subr.bf16.mxu0 %v3078_v0 }
 0x989   :  { %2797 = vmatpush3.bf16.msra.mxu0 %v3443_v5 }
 0x98a   :  { %2798 = vmatprep.subr.bf16.mxu0 %v3078_v0 }
 0x98d   :  { %2800 = vmatpush3.bf16.msra.mxu0 %v3447_v8 }
 0x98e   :  { %2801 = vmatprep.subr.bf16.mxu0 %v3078_v0 }
 0x991   :  { %2803 = vmatpush3.bf16.msra.mxu0 %v3452_v15 }
 0x992   :  { %2804 = vmatprep.subr.bf16.mxu0 %v3078_v0 }
 0x995   :  { %2806 = vmatpush3.bf16.msra.mxu0 %v3457_v25 }
 0x996   :  { %2807 = vmatprep.subr.bf16.mxu0 %v3078_v0 }
 0x999   :  { %2809 = vmatpush3.bf16.msra.mxu0 %v3461_v30 }
 0xa4f   :  { %v1162_v43 = vpop.f32.mrb[10].mxu0 }
 0xa50   :  { %v1166_v44 = vadd.f32 %v1162_v43, %v3507_v22  ;;  %v2295_v45 = vpop.f32.mrb[11].mxu0 }
 0xa52   :  { %2898 = vtanh.f32 %v1166_v44 }
 0xa5c   :  { %v3553_v46 = vpop.eup %2898 }
 0xa5d   :  { %2329 = vmatmul.mubr.f32.vlgmr.msra.gmra.mrb[20].mxu1 %v3553_v46 }
 0xa5e   :  { %2812 = vmatpush3.bf16.msra.mxu1 %v3430_v57  ;;  %2398 = vmatprep.mubr.msk.f32.mxu1 %vm3079_vm0, %v3080_v1  ;;  %v1384_v1 = vld [vmem:[#allocation11] sm:$0xff]  ;;  %v1389_v57 = vld [vmem:[#allocation11 + $0x28] sm:$0xff] }
 0xa5f   :  { %2813 = vmatprep.subr.bf16.mxu1 %v3078_v0  ;;  %v2834_v48 = vpack.c.bf16 %v1385_v47, %v1384_v1 }
 0xa61   :  { %2835 = vmatprep.subr.bf16.mxu0 %v2834_v48 }
 0xa62   :  { %2815 = vmatpush3.bf16.msra.mxu1 %v3433_v61  ;;  %v1392_v61 = vld [vmem:[#allocation11 + $0x40] sm:$0xff] }
 0xa63   :  { %2816 = vmatprep.subr.bf16.mxu1 %v3078_v0  ;;  %v2850_v63 = vpack.c.bf16 %v1393_v62, %v1392_v61 }
 0xa66   :  { %2818 = vmatpush3.bf16.msra.mxu1 %v3439_v2  ;;  %v1394_v2 = vld [vmem:[#allocation11 + $0x50] sm:$0xff] }
 0xa67   :  { %2819 = vmatprep.subr.bf16.mxu1 %v3078_v0  ;;  %v2854_v4 = vpack.c.bf16 %v1395_v3, %v1394_v2 }
 0xa6a   :  { %2821 = vmatpush3.bf16.msra.mxu1 %v3443_v5  ;;  %v1396_v5 = vld [vmem:[#allocation11 + $0x60] sm:$0xff] }
 0xa6b   :  { %2822 = vmatprep.subr.bf16.mxu1 %v3078_v0  ;;  %v2858_v7 = vpack.c.bf16 %v1397_v6, %v1396_v5 }
 0xa6e   :  { %2824 = vmatpush3.bf16.msra.mxu1 %v3447_v8  ;;  %v1398_v8 = vld [vmem:[#allocation11 + $0x70] sm:$0xff] }
 0xa6f   :  { %2825 = vmatprep.subr.bf16.mxu1 %v3078_v0  ;;  %v2862_v11 = vpack.c.bf16 %v1399_v10, %v1398_v8 }
 0xa72   :  { %2827 = vmatpush3.bf16.msra.mxu1 %v3452_v15 }
 0xa73   :  { %2828 = vmatprep.subr.bf16.mxu1 %v3078_v0 }
 0xa76   :  { %2830 = vmatpush3.bf16.msra.mxu1 %v3457_v25 }
 0xa77   :  { %2831 = vmatprep.subr.bf16.mxu1 %v3078_v0  ;;  %v2842_v0 = vpack.c.bf16 %v1389_v57, %v1388_v56 }
 0xa7a   :  { %2833 = vmatpush3.bf16.msra.mxu1 %v3461_v30 }
 0xb30   :  { %v1234_v49 = vpop.f32.mrb[20].mxu1 }
 0xb31   :  { %v1238_v50 = vadd.f32 %v1234_v49, %v3507_v22  ;;  %v2330_v51 = vpop.f32.mrb[21].mxu1 }
 0xb33   :  { %2900 = vtanh.f32 %v1238_v50 }
 0xb3d   :  { %v2901_v55 = vpop.eup %2900 }
 0xb3e   :  { %2364 = vmatmul.mubr.f32.vlgmr.msra.gmra.mrb[12].mxu0 %v2901_v55 }
 0xb3f   :  { %2837 = vmatpush3.bf16.msra.mxu0 %v2834_v48  ;;  %2433 = vmatprep.mubr.f32.mxu0 %v3510_v38 }
 0xb40   :  { %2839 = vmatprep.subr.bf16.mxu0 %v2838_v54 }
 0xb43   :  { %2841 = vmatpush3.bf16.msra.mxu0 %v2838_v54 }
 0xb44   :  { %2843 = vmatprep.subr.bf16.mxu0 %v2842_v0 }
 0xb47   :  { %2845 = vmatpush3.bf16.msra.mxu0 %v2842_v0 }
 0xb48   :  { %2847 = vmatprep.subr.bf16.mxu0 %v2846_v60 }
 0xb4b   :  { %2849 = vmatpush3.bf16.msra.mxu0 %v2846_v60 }
 0xb4c   :  { %2851 = vmatprep.subr.bf16.mxu0 %v2850_v63 }
 0xb4f   :  { %2853 = vmatpush3.bf16.msra.mxu0 %v2850_v63 }
 0xb50   :  { %2855 = vmatprep.subr.bf16.mxu0 %v2854_v4 }
 0xb53   :  { %2857 = vmatpush3.bf16.msra.mxu0 %v2854_v4 }
 0xb54   :  { %2859 = vmatprep.subr.bf16.mxu0 %v2858_v7 }
 0xb57   :  { %2861 = vmatpush3.bf16.msra.mxu0 %v2858_v7 }
 0xb58   :  { %2863 = vmatprep.subr.bf16.mxu0 %v2862_v11 }
 0xb5b   :  { %2865 = vmatpush3.bf16.msra.mxu0 %v2862_v11 }
 0xb5e   :  { %2434 = vmatmul.mubr.f32.vlgmr.msra.gmra.mrb[14].mxu0 %v3532_v42 }
 0xb5f   :  { %2436 = vmatprep.mubr.f32.mxu0 %v3553_v46 }
 0xb62   :  { %2437 = vmatmul.mubr.f32.gmra.mrb[16].mxu0 %v2901_v55 }
 0xc11   :  { %v1306_v12 = vpop.f32.mrb[12].mxu0 }
 0xc12   :  { %v1310_v13 = vadd.f32 %v1306_v12, %v3507_v22  ;;  %v2365_v14 = vpop.f32.mrb[13].mxu0 }
 0xc14   :  { %2902 = vtanh.f32 %v1310_v13 }
 0xc1e   :  { %v2903_v15 = vpop.eup %2902 }
 0xc1f   :  { %2399 = vmatmul.mubr.f32.vlgmr.msra.gmra.mrb[22].mxu1 %v2903_v15  ;;  %2439 = vmatprep.mubr.f32.mxu0 %v2903_v15 }
 0xc31   :  { %v2435_v18 = vpop.f32.mrb[14].mxu0 }
 0xc32   :  { %v1479_v19 = vadd.f32 %v2435_v18, %v1530_v17  ;;  %v1473_v20 = vpop.f32.mrb[15].mxu0 }
 0xc33   :  { %v1474_v21 = vadd.f32 %v1530_v17, %v1473_v20 }
 0xc34   :  { %1503 = vst [vmem:[#allocation13 + $0x8] sm:$0xff] %v1479_v19 }
 0xc35   :  { %1502 = vst [vmem:[#allocation13] sm:$0xff] %v1474_v21  ;;  %v2438_v23 = vpop.f32.mrb[16].mxu0 }
 0xc36   :  { %v1489_v24 = vadd.f32 %v2438_v23, %v1530_v17  ;;  %v1483_v25 = vpop.f32.mrb[17].mxu0 }
 0xc37   :  { %v1484_v26 = vadd.f32 %v1530_v17, %v1483_v25 }
 0xc38   :  { %1505 = vst [vmem:[#allocation13 + $0x18] sm:$0xff] %v1489_v24 }
 0xc39   :  { %1504 = vst [vmem:[#allocation13 + $0x10] sm:$0xff] %v1484_v26 }
 0xcf2   :  { %v1378_v27 = vpop.f32.mrb[22].mxu1 }
 0xcf3   :  { %v1382_v29 = vadd.f32 %v1378_v27, %v3507_v22  ;;  %v2400_v30 = vpop.f32.mrb[23].mxu1 }
 0xcf5   :  { %2904 = vtanh.f32 %v1382_v29 }
 0xcff   :  { %v2905_v31 = vpop.eup %2904 }
 0xd00   :  { %2440 = vmatmul.mubr.f32.gmra.mrb[18].mxu0 %v2905_v31 }
 0xdd3   :  { %v2441_v32 = vpop.f32.mrb[18].mxu0 }
 0xdd4   :  { %v1499_v33 = vadd.f32 %v2441_v32, %v1530_v17  ;;  %v1493_v35 = vpop.f32.mrb[19].mxu0 }
 0xdd5   :  { %v1494_v9 = vadd.f32 %v1530_v17, %v1493_v35 }
 0xdd6   :  { %1507 = vst [vmem:[#allocation13 + $0x28] sm:$0xff] %v1499_v33 }
 0xdd7   :  { %1506 = vst [vmem:[#allocation13 + $0x20] sm:$0xff] %v1494_v9 }
 0xdd8   :  { %3049 = shalt.err (!%p3046_p10)
}
 0xdd9   :  { %s3050_s26 = scalar_lea.hbm %s3606_s9, 768 }
 0xdda   :  { %p3051_p11 = scmp.ne.s32.totalorder %s3606_s9, %s3050_s26  ;;  %p3054_p12 = scmp.lt.u32.totalorder %s3050_s26, %s3606_s9 }
 0xddc   :  { %p3056_p13 = pnand %p3054_p12, %p3051_p11 }
 0xdde   :  { %3059 = shalt.err (!%p3056_p13)
}
 0xddf   :  { %1519 = dma.vmem_to_hbm [thread:$0]  %s1514_s20, 768, %s3606_s9, [#allocation4], %s3072_s21, %s3072_s21, %s3073_s22  }
 0xde0   :  { %3068 = dma.done.wait [#allocation4], 768  }
 0xde1   :  { %3069 = vsyncadd [#allocation4], 4294966528 }
 0xde2   :  { %1523 = vsyncpa [#allocation3], 1 }
 0xde3   :  { %1524 = vsyncpa [#allocation6], 1 }
 0xde4   :  { %1525 = vsyncpa [#allocation9], 1 }
 0xde5   :  { %1526 = vsyncpa [#allocation12], 1 }
 0xde6   :  { %1527 = vsyncpa [#allocation4], 1 }

</bundles_post_ra>
